<compile_context>
chip_gen: v7x
topology: tpu7x:2x2x1
jax: 0.10.0
libtpu: 0.0.40
codegen_flags: <defaults>
</compile_context>

<pallas_src>
import functools

import jax
import jax.numpy as jnp
from jax.experimental import pallas as pl
from jax.experimental.pallas import tpu as pltpu


def relinear_kernel(prefix_ref, rest_ref, wp_ref, wr_ref, bias_ref, out_ref,
                    *, precision):
    # Fused hot path: two MXU matmuls + f32 bias add on one VMEM-resident tile.
    acc = jnp.dot(prefix_ref[...], wp_ref[...],
                  preferred_element_type=jnp.float32, precision=precision)
    acc = acc + jnp.dot(rest_ref[...], wr_ref[...],
                        preferred_element_type=jnp.float32, precision=precision)
    acc = acc + bias_ref[...]                     # (1, pack*E) f32 broadcast
    out_ref[...] = acc.astype(out_ref.dtype)


def _block_diag(w, pack):
    """(in, out) -> (pack*in, pack*out) block-diagonal replication of w."""
    if pack == 1:
        return w
    in_d, out_d = w.shape
    eye = jnp.eye(pack, dtype=w.dtype)
    return jnp.einsum("pq,ij->piqj", eye, w).reshape(pack * in_d, pack * out_d)


def _padded_tile_bytes(rows, cols, dtype):
    """VMEM bytes of a (rows, cols) tile after (sublane, 128-lane) padding."""
    itemsize = jnp.dtype(dtype).itemsize
    sub = 8 * max(1, 4 // itemsize)               # 8 rows for f32, 16 for bf16
    r = -(-rows // sub) * sub
    c = -(-cols // 128) * 128
    return r * c * itemsize


def prepare_relinear_params(w_prefix, b_prefix, w_rest, *,
                            compute_dtype=jnp.bfloat16, pack=None):
    """One-time parameter prep (call at init, not per forward).

    PyTorch Linear stores weight as (out, in); transpose once, cast to the
    compute dtype, and build block-diagonal x`pack` replicas so the kernel's
    output last dim is lane-dense (pack*E == 128 when 128 % E == 0).
    """
    E, P = w_prefix.shape
    E2, R = w_rest.shape
    assert E == E2, "prefix / rest output dims must match"
    if pack is None:
        pack = (128 // E) if (E < 128 and 128 % E == 0) else 1

    wp_t = jnp.transpose(w_prefix).astype(compute_dtype)     # (P, E)
    wr_t = jnp.transpose(w_rest).astype(compute_dtype)       # (R, E)
    wp_blk = _block_diag(wp_t, pack)                          # (pack*P, pack*E)
    wr_blk = _block_diag(wr_t, pack)                          # (pack*R, pack*E)
    # Bias stays f32: it is added to the f32 accumulator inside the kernel.
    bias_tiled = jnp.tile(b_prefix.astype(jnp.float32).reshape(1, E), (1, pack))

    return dict(wp=wp_blk, wr=wr_blk, bias=bias_tiled,
                pack=pack, P=P, R=R, E=E)


def relinear(prefix_embed, rest_embed, params, *, tm=2048,
             use_core_parallel=False):
    """Forward pass mirroring ReLinear.forward.

    params: dict from prepare_relinear_params.
    tm: batch tile size in *packed* rows per grid step (rounded up to a
        multiple of 8).  Default 2048 packed rows (= 8192 original rows at
        pack=4) so per-step HBM traffic dominates the fixed pipeline overhead.
    """
    P, R, E, pack = params["P"], params["R"], params["E"], params["pack"]
    wp, wr, bias = params["wp"], params["wr"], params["bias"]
    compute_dtype = wp.dtype

    # .view(-1, dim) equivalents + cast to the compute dtype (layout glue).
    prefix2d = prefix_embed.reshape(-1, P).astype(compute_dtype)
    rest2d = rest_embed.reshape(-1, R).astype(compute_dtype)
    assert prefix2d.shape[0] == rest2d.shape[0], "batch mismatch after view"
    B = prefix2d.shape[0]

    # Pad batch to a multiple of `pack`, then fold pack rows into one
    # lane-dense packed row (contiguous reshape, no data movement beyond pad).
    pad = (-B) % pack
    if pad:
        prefix2d = jnp.pad(prefix2d, ((0, pad), (0, 0)))
        rest2d = jnp.pad(rest2d, ((0, pad), (0, 0)))
    Bp = (B + pad) // pack
    prefix_packed = prefix2d.reshape(Bp, pack * P)
    rest_packed = rest2d.reshape(Bp, pack * R)

    # Batch tile over packed rows: full batch if smaller than tm (block ==
    # full dim is always legal), otherwise tm rounded up to a multiple of 8.
    tm = -(-tm // 8) * 8
    TM = Bp if Bp <= tm else tm
    grid = (pl.cdiv(Bp, TM),)

    # Right-size scoped VMEM from the padded, double-buffered footprint.
    io_bytes = (_padded_tile_bytes(TM, pack * P, compute_dtype)
                + _padded_tile_bytes(TM, pack * R, compute_dtype)
                + _padded_tile_bytes(TM, pack * E, jnp.float32))
    w_bytes = (_padded_tile_bytes(pack * P, pack * E, compute_dtype)
               + _padded_tile_bytes(pack * R, pack * E, compute_dtype)
               + _padded_tile_bytes(1, pack * E, jnp.float32))
    acc_bytes = _padded_tile_bytes(TM, pack * E, jnp.float32)
    footprint = 2 * (io_bytes + w_bytes) + acc_bytes
    vmem_limit = int(min(max(2 * footprint, 8 * 1024 * 1024), 64 * 1024 * 1024))

    flops = 2 * Bp * (pack * P + pack * R) * (pack * E)
    in_itemsize = jnp.dtype(compute_dtype).itemsize
    bytes_accessed = (Bp * (pack * P + pack * R) * in_itemsize
                      + Bp * pack * E * 4
                      + (pack * P + pack * R) * pack * E * in_itemsize
                      + pack * E * 4)

    # Exact f32 parity when compute dtype is f32; native bf16 MXU otherwise.
    precision = (jax.lax.Precision.HIGHEST
                 if compute_dtype == jnp.float32 else jax.lax.Precision.DEFAULT)

    dims = ((pltpu.CORE_PARALLEL,) if use_core_parallel else ("parallel",))

    out_packed = pl.pallas_call(
        functools.partial(relinear_kernel, precision=precision),
        out_shape=jax.ShapeDtypeStruct((Bp, pack * E), jnp.float32),
        grid=grid,
        in_specs=[
            # Streamed batch tiles (double-buffered by the Pallas pipeline).
            pl.BlockSpec((TM, pack * P), lambda i: (i, 0)),
            pl.BlockSpec((TM, pack * R), lambda i: (i, 0)),
            # Weights / bias: constant index_map -> fetched once, VMEM-resident.
            pl.BlockSpec((pack * P, pack * E), lambda i: (0, 0)),
            pl.BlockSpec((pack * R, pack * E), lambda i: (0, 0)),
            pl.BlockSpec((1, pack * E), lambda i: (0, 0)),
        ],
        out_specs=pl.BlockSpec((TM, pack * E), lambda i: (i, 0)),
        compiler_params=pltpu.CompilerParams(
            dimension_semantics=dims,
            vmem_limit_bytes=vmem_limit,
        ),
        cost_estimate=pl.CostEstimate(
            flops=flops, transcendentals=0, bytes_accessed=bytes_accessed),
    )(prefix_packed, rest_packed, wp, wr, bias)

    # Unpack: (Bp, pack*E) -> (Bp*pack, E), drop pad rows.
    out = out_packed.reshape(Bp * pack, E)[:B]
    return out


if __name__ == "__main__":
    # Small deterministic setup.
    embed_dim = 32
    prefix_input_dim = 16
    rest_input_dim = 24
    batch = 8

    key = jax.random.PRNGKey(0)
    k1, k2, k3, k4, k5, k6, k7 = jax.random.split(key, 7)

    # Synthetic "parameters" in PyTorch Linear layout: (out_features, in_features).
    w_prefix = jax.random.normal(k1, (embed_dim, prefix_input_dim), jnp.float32) * 0.1
    b_prefix = jax.random.normal(k2, (embed_dim,), jnp.float32) * 0.1
    w_rest = jax.random.normal(k3, (embed_dim, rest_input_dim), jnp.float32) * 0.1

    # --- Test 1: f32 compute (exact parity path), small batch, prefix with
    # leading structure to exercise .view(-1, P). pack=4 (4*E == 128).
    params_f32 = prepare_relinear_params(
        w_prefix, b_prefix, w_rest, compute_dtype=jnp.float32)

    prefix_embed = jax.random.normal(k4, (batch, 2, prefix_input_dim // 2), jnp.float32)
    rest_embed = jax.random.normal(k5, (batch, rest_input_dim), jnp.float32)

    out = relinear(prefix_embed, rest_embed, params_f32)
    out = jax.block_until_ready(out)

    ref = (prefix_embed.reshape(-1, prefix_input_dim) @ w_prefix.T + b_prefix
           + rest_embed.reshape(-1, rest_input_dim) @ w_rest.T)
    assert out.shape == (batch, embed_dim)
    assert jnp.allclose(out, ref, atol=1e-5, rtol=1e-5), "mismatch vs reference (f32)"

    # --- Test 2: bf16 compute (default, bandwidth-optimized path), batch not a
    # multiple of pack (exercises padding), tile smaller than the packed batch
    # (exercises the multi-step pipelined grid with a partial last tile).
    params_bf16 = prepare_relinear_params(
        w_prefix, b_prefix, w_rest, compute_dtype=jnp.bfloat16)

    big_batch = 301
    prefix_big = jax.random.normal(k6, (big_batch, prefix_input_dim), jnp.float32)
    rest_big = jax.random.normal(k7, (big_batch, rest_input_dim), jnp.float32)

    out_big = relinear(prefix_big, rest_big, params_bf16, tm=16)
    out_big = jax.block_until_ready(out_big)

    ref_big = (prefix_big @ w_prefix.T + b_prefix + rest_big @ w_rest.T)
    assert out_big.shape == (big_batch, embed_dim)
    assert jnp.allclose(out_big, ref_big, atol=3e-2, rtol=3e-2), \
        "mismatch vs reference (bf16 tiled)"

    print("KERNEL_OK")
</pallas_src>

<mosaic_0001>
module attributes {stable_mosaic.version = 11 : i64} {
  func.func @relinear_kernel(%arg0: i32, %arg1: memref<2x64xf32, #tpu.memory_space<vmem>>, %arg2: memref<2x96xf32, #tpu.memory_space<vmem>>, %arg3: memref<64x128xf32, #tpu.memory_space<vmem>>, %arg4: memref<96x128xf32, #tpu.memory_space<vmem>>, %arg5: memref<1x128xf32, #tpu.memory_space<vmem>>, %arg6: memref<2x128xf32, #tpu.memory_space<vmem>>) attributes {dimension_semantics = [#tpu.dimension_semantics<parallel>], iteration_bounds = array<i64: 1>, scalar_prefetch = 0 : i64, scratch_operands = 0 : i64, tpu.core_type = #tpu.core_type<tc>, window_params = [{transform_indices = @transform_0, window_bounds = array<i64: 2, 64>}, {transform_indices = @transform_1, window_bounds = array<i64: 2, 96>}, {pipeline_mode = #tpu.pipeline_mode<synchronous>, transform_indices = @transform_2, window_bounds = array<i64: 64, 128>}, {pipeline_mode = #tpu.pipeline_mode<synchronous>, transform_indices = @transform_3, window_bounds = array<i64: 96, 128>}, {pipeline_mode = #tpu.pipeline_mode<synchronous>, transform_indices = @transform_4, window_bounds = array<i64: 1, 128>}, {transform_indices = @transform_5, window_bounds = array<i64: 2, 128>}]} {
    %c0 = arith.constant 0 : index
    %c0_0 = arith.constant 0 : index
    %0 = vector.load %arg1[%c0, %c0_0] : memref<2x64xf32, #tpu.memory_space<vmem>>, vector<2x64xf32>
    %c0_1 = arith.constant 0 : index
    %c0_2 = arith.constant 0 : index
    %1 = vector.load %arg3[%c0_1, %c0_2] : memref<64x128xf32, #tpu.memory_space<vmem>>, vector<64x128xf32>
    %cst = arith.constant dense<0.000000e+00> : vector<2x128xf32>
    %2 = tpu.matmul %0, %1, %cst {dimension_numbers = #tpu.dot_dimension_numbers<[1], [0], [0], [1], [0, 0, 1, 1], [], []>, precision = #tpu.contract_precision<fp32>} : vector<2x64xf32>, vector<64x128xf32>, vector<2x128xf32> -> vector<2x128xf32>
    %c0_3 = arith.constant 0 : index
    %c0_4 = arith.constant 0 : index
    %3 = vector.load %arg2[%c0_3, %c0_4] : memref<2x96xf32, #tpu.memory_space<vmem>>, vector<2x96xf32>
    %c0_5 = arith.constant 0 : index
    %c0_6 = arith.constant 0 : index
    %4 = vector.load %arg4[%c0_5, %c0_6] : memref<96x128xf32, #tpu.memory_space<vmem>>, vector<96x128xf32>
    %cst_7 = arith.constant dense<0.000000e+00> : vector<2x128xf32>
    %5 = tpu.matmul %3, %4, %cst_7 {dimension_numbers = #tpu.dot_dimension_numbers<[1], [0], [0], [1], [0, 0, 1, 1], [], []>, precision = #tpu.contract_precision<fp32>} : vector<2x96xf32>, vector<96x128xf32>, vector<2x128xf32> -> vector<2x128xf32>
    %6 = arith.addf %2, %5 : vector<2x128xf32>
    %c0_8 = arith.constant 0 : index
    %c0_9 = arith.constant 0 : index
    %7 = vector.load %arg5[%c0_8, %c0_9] : memref<1x128xf32, #tpu.memory_space<vmem>>, vector<1x128xf32>
    %8 = vector.broadcast %7 : vector<1x128xf32> to vector<2x128xf32>
    %9 = arith.addf %6, %8 : vector<2x128xf32>
    %c0_10 = arith.constant 0 : index
    %c0_11 = arith.constant 0 : index
    %10 = vector.load %arg6[%c0_10, %c0_11] : memref<2x128xf32, #tpu.memory_space<vmem>>, vector<2x128xf32>
    tpu.vector_store %arg6[%c0_10, %c0_11], %9 {strides = array<i32>} : memref<2x128xf32, #tpu.memory_space<vmem>>, vector<2x128xf32>,
    return
  }
  func.func @transform_0(%arg0: i32) -> (i32, i32) {
    %c0_i32 = arith.constant 0 : i32
    %c0_i32_0 = arith.constant 0 : i32
    return %arg0, %c0_i32 : i32, i32
  }
  func.func @transform_1(%arg0: i32) -> (i32, i32) {
    %c0_i32 = arith.constant 0 : i32
    %c0_i32_0 = arith.constant 0 : i32
    return %arg0, %c0_i32 : i32, i32
  }
  func.func @transform_2(%arg0: i32) -> (i32, i32) {
    %c0_i32 = arith.constant 0 : i32
    %c0_i32_0 = arith.constant 0 : i32
    %c0_i32_1 = arith.constant 0 : i32
    return %c0_i32, %c0_i32_0 : i32, i32
  }
  func.func @transform_3(%arg0: i32) -> (i32, i32) {
    %c0_i32 = arith.constant 0 : i32
    %c0_i32_0 = arith.constant 0 : i32
    %c0_i32_1 = arith.constant 0 : i32
    return %c0_i32, %c0_i32_0 : i32, i32
  }
  func.func @transform_4(%arg0: i32) -> (i32, i32) {
    %c0_i32 = arith.constant 0 : i32
    %c0_i32_0 = arith.constant 0 : i32
    %c0_i32_1 = arith.constant 0 : i32
    return %c0_i32, %c0_i32_0 : i32, i32
  }
  func.func @transform_5(%arg0: i32) -> (i32, i32) {
    %c0_i32 = arith.constant 0 : i32
    %c0_i32_0 = arith.constant 0 : i32
    return %arg0, %c0_i32 : i32, i32
  }
}

</mosaic_0001>

<bundles_post_ra>
// kernel: tpu_custom_call.1
= control target key start
LH: loop header
LB: loop body
LE: loop exit
PB: predicated region body
PF: predicated region fallthrough
CT: control target
= control target key end

     0   :  { %10 = vsyncpa [#allocation3], 0  ;;  %s2377_s0 = inlined_call_operand.hbm [shape: f32[2,64], index: 0, kind: input, shape index: {}]   ;;  %s2378_s1 = inlined_call_operand.vmem [shape: f32[2,96], index: 1, kind: input, shape index: {}]   ;;  %s2379_s2 = inlined_call_operand.hbm [shape: f32[64,128], index: 2, kind: input, shape index: {}]   ;;  %s2380_s3 = inlined_call_operand.hbm [shape: f32[96,128], index: 3, kind: input, shape index: {}]   ;;  %s2381_s4 = inlined_call_operand.vmem [shape: f32[1,128], index: 4, kind: input, shape index: {}]   ;;  %s2382_s5 = inlined_call_operand.hbm [shape: f32[2,128], index: 5, kind: output, shape index: {}]  }
   0x1   :  { %11 = vsyncpa [#allocation6], 0 }
   0x2   :  { %12 = vsyncpa [#allocation4], 0  ;;  %s1933_s18 = smov [#allocation5]   ;;  %s1839_s22 = scalar_lea.hbm %s2379_s2, 1024 }
   0x3   :  { %s30_s19 = sshll.u32 %s1933_s18, 4  ;;  %p1840_p0 = scmp.ne.s32.totalorder %s2379_s2, %s1839_s22  ;;  %s31_s19 = int_to_ptr.vmem [resolvable:$true] %s30_s19 }
   0x4   :  { %p1843_p1 = scmp.lt.u32.totalorder %s1839_s22, %s2379_s2 }
   0x6   :  { %p1845_p2 = pnand %p1843_p1, %p1840_p0 }
   0x8   :  { %1848 = shalt.err (!%p1845_p2)
}
   0x9   :  { %s1849_s27 = scalar_lea.vmem %s31_s19, 1024  ;;  %p1854_p4 = scmp.lt.s32.totalorder %s31_s19, %s31_s19 }
   0xa   :  { %p1850_p3 = scmp.ne.s32.totalorder %s31_s19, %s1849_s27  ;;  %p1855_p5 = scmp.lt.s32.totalorder %s1849_s27, %s1849_s27 }
   0xc   :  { %p1856_p6 = por %p1855_p5, %p1854_p4 }
   0xe   :  { %p1857_p7 = pnand %p1856_p6, %p1850_p3 }
  0x10   :  { %1860 = shalt.err (!%p1857_p7)
}
  0x11   :  { %s1934_s28 = smov 128   ;;  %s1935_s29 = smov 8  }
  0x12   :  { %36 = dma.hbm_to_vmem [thread:$0]  %s2379_s2, 1024, %s31_s19, [#allocation6], %s1934_s28, %s1934_s28, %s1935_s29  }
  0x13   :  { %s1936_s7 = smov [#allocation2]   ;;  %s1937_s9 = smov [#allocation7]  }
  0x14   :  { %s19_s8 = sshll.u32 %s1936_s7, 4  ;;  %s42_s10 = sshll.u32 %s1937_s9, 4  ;;  %s20_s8 = int_to_ptr.vmem [resolvable:$true] %s19_s8  ;;  %s43_s10 = int_to_ptr.vmem [resolvable:$true] %s42_s10 }
  0x15   :  { %s1861_s13 = scalar_lea.hbm %s2377_s0, 32 }
  0x16   :  { %p1862_p8 = scmp.ne.s32.totalorder %s2377_s0, %s1861_s13  ;;  %p1865_p9 = scmp.lt.u32.totalorder %s1861_s13, %s2377_s0 }
  0x18   :  { %p1867_p10 = pnand %p1865_p9, %p1862_p8 }
  0x1a   :  { %1870 = shalt.err (!%p1867_p10)
}
  0x1b   :  { %s1871_s2 = scalar_lea.vmem %s20_s8, 32  ;;  %p1876_p12 = scmp.lt.s32.totalorder %s20_s8, %s20_s8 }
  0x1c   :  { %p1872_p11 = scmp.ne.s32.totalorder %s20_s8, %s1871_s2  ;;  %p1877_p13 = scmp.lt.s32.totalorder %s1871_s2, %s1871_s2 }
  0x1e   :  { %p1878_p0 = por %p1877_p13, %p1876_p12 }
  0x20   :  { %p1879_p1 = pnand %p1878_p0, %p1872_p11 }
  0x22   :  { %1882 = shalt.err (!%p1879_p1)
}
  0x23   :  { %22 = dma.hbm_to_vmem [thread:$0]  %s2377_s0, 32, %s20_s8, [#allocation3]  }
  0x24   :  { %s1883_s22 = scalar_lea.hbm %s2380_s3, 1536 }
  0x25   :  { %p1884_p2 = scmp.ne.s32.totalorder %s2380_s3, %s1883_s22  ;;  %p1887_p3 = scmp.lt.u32.totalorder %s1883_s22, %s2380_s3 }
  0x27   :  { %p1889_p4 = pnand %p1887_p3, %p1884_p2 }
  0x29   :  { %1892 = shalt.err (!%p1889_p4)
}
  0x2a   :  { %s1893_s27 = scalar_lea.vmem %s43_s10, 1536  ;;  %p1898_p6 = scmp.lt.s32.totalorder %s43_s10, %s43_s10 }
  0x2b   :  { %p1894_p5 = scmp.ne.s32.totalorder %s43_s10, %s1893_s27  ;;  %p1899_p7 = scmp.lt.s32.totalorder %s1893_s27, %s1893_s27 }
  0x2d   :  { %p1900_p8 = por %p1899_p7, %p1898_p6 }
  0x2f   :  { %p1901_p9 = pnand %p1900_p8, %p1894_p5 }
  0x31   :  { %1904 = shalt.err (!%p1901_p9)
}
  0x32   :  { %48 = dma.hbm_to_vmem [thread:$0]  %s2380_s3, 1536, %s43_s10, [#allocation6], %s1934_s28, %s1934_s28, %s1935_s29  }
  0x33   :  { %1927 = dma.done.wait [#allocation3], 32  }
  0x34   :  { %1928 = vsyncadd [#allocation3], 4294967264 }
  0x35   :  { %1929 = dma.done.wait [#allocation6], 2560  }
  0x36   :  { %1930 = vsyncadd [#allocation6], 4294964736  ;;  %v1938_v0 = vmov 0.0|0.0   ;;  %vm1939_vm0 = vmmov 0   ;;  %v1940_v1 = vmov 0.0   ;;  %v70_v2 = vld [vmem:[#allocation7] sm:$0xff] }
  0x37   :  { %1650 = vmatprep.subr.bf16.mxu0 %v1938_v0  ;;  %1668 = vmatprep.subr.bf16.mxu1 %v1938_v0  ;;  %v71_v3 = vld [vmem:[#allocation7 + $0x8] sm:$0xff]  ;;  %v72_v4 = vld [vmem:[#allocation7 + $0x10] sm:$0xff]  ;;  %v87_v5 = vand.u32 4294901760, %v70_v2  ;;  %v73_v7 = vld [vmem:[#allocation7 + $0x18] sm:$0xff]  ;;  %vm82_vm1 = vcmask 785408   ;;  %vm675_vm2 = vcmask 523264  }
  0x38   :  { %1398 = vmatprep.mubr.msk.f32.mxu0 %vm1939_vm0, %v1940_v1  ;;  %1425 = vmatprep.mubr.msk.f32.mxu1 %vm1939_vm0, %v1940_v1  ;;  %v90_v6 = vand.u32 4294901760, %v71_v3  ;;  %v93_v8 = vand.u32 4294901760, %v72_v4  ;;  %v74_v9 = vld [vmem:[#allocation7 + $0x20] sm:$0xff]  ;;  %v75_v10 = vld [vmem:[#allocation7 + $0x28] sm:$0xff]  ;;  %v96_v11 = vand.u32 4294901760, %v73_v7  ;;  %v76_v14 = vld [vmem:[#allocation7 + $0x30] sm:$0xff] }
  0x39   :  { %v99_v12 = vand.u32 4294901760, %v74_v9  ;;  %v102_v13 = vand.u32 4294901760, %v75_v10  ;;  %v2022_v16 = vsub.f32 %v70_v2, %v87_v5  ;;  %v77_v19 = vld [vmem:[#allocation7 + $0x38] sm:$0xff]  ;;  %v78_v20 = vld [vmem:[#allocation7 + $0x40] sm:$0xff]  ;;  %v79_v23 = vld [vmem:[#allocation7 + $0x48] sm:$0xff]  ;;  %v105_v27 = vand.u32 4294901760, %v76_v14 }
  0x3a   :  { %v2020_v15 = vpack.c.bf16 %v90_v6, %v87_v5  ;;  %v2024_v17 = vsub.f32 %v71_v3, %v90_v6  ;;  %v2026_v18 = vsub.f32 %v72_v4, %v93_v8  ;;  %v2028_v21 = vpack.c.bf16 %v96_v11, %v93_v8  ;;  %v80_v40 = vld [vmem:[#allocation7 + $0x50] sm:$0xff]  ;;  %v81_v41 = vld [vmem:[#allocation7 + $0x58] sm:$0xff]  ;;  %s1941_s6 = smov [#allocation8]  }
  0x3b   :  { %v2030_v22 = vsub.f32 %v73_v7, %v96_v11  ;;  %v2033_v24 = vsub.f32 %v74_v9, %v99_v12  ;;  %v176_v25 = vand.u32 4294901760, %v2022_v16  ;;  %v108_v28 = vand.u32 4294901760, %v77_v19  ;;  %v69_v50 = vld [vmem:[%s2378_s1] sm:$0x3]  ;;  %s1231_s7 = sshll.u32 %s1941_s6, 4  ;;  %s1232_s7 = int_to_ptr.vmem [resolvable:$true] %s1231_s7 }
  0x3c   :  { %1652 = vmatpush3.bf16.msra.mxu0 %v2020_v15  ;;  %v183_v26 = vand.u32 4294901760, %v2024_v17  ;;  %v190_v29 = vand.u32 4294901760, %v2026_v18  ;;  %v111_v31 = vand.u32 4294901760, %v78_v20  ;;  %v2040_v32 = vsub.f32 %v75_v10, %v102_v13  ;;  %s1905_s8 = scalar_lea.vmem %s1232_s7, 32  ;;  %p1910_p11 = scmp.lt.s32.totalorder %s1232_s7, %s1232_s7 }
  0x3d   :  { %1653 = vmatprep.subr.bf16.mxu0 %v1938_v0  ;;  %v197_v30 = vand.u32 4294901760, %v2030_v22  ;;  %v177_v33 = vsub.f32 %v2022_v16, %v176_v25  ;;  %v114_v35 = vand.u32 4294901760, %v79_v23  ;;  %v2048_v36 = vsub.f32 %v76_v14, %v105_v27  ;;  %p1906_p10 = scmp.ne.s32.totalorder %s1232_s7, %s1905_s8  ;;  %p1911_p12 = scmp.lt.s32.totalorder %s1905_s8, %s1905_s8 }
  0x3e   :  { %v184_v34 = vsub.f32 %v2024_v17, %v183_v26  ;;  %v2050_v37 = vsub.f32 %v77_v19, %v108_v28  ;;  %v191_v38 = vsub.f32 %v2026_v18, %v190_v29  ;;  %v2059_v42 = vpack.c.bf16 %v102_v13, %v99_v12 }
  0x3f   :  { %v198_v39 = vsub.f32 %v2030_v22, %v197_v30  ;;  %v178_v43 = vand.u32 4294901760, %v177_v33  ;;  %v2061_v45 = vsub.f32 %v78_v20, %v111_v31  ;;  %v2064_v48 = vsub.f32 %v79_v23, %v114_v35  ;;  %p1912_p13 = por %p1911_p12, %p1910_p11 }
  0x40   :  { %1655 = vmatpush3.bf16.msra.mxu0 %v2028_v21  ;;  %v185_v44 = vand.u32 4294901760, %v184_v34  ;;  %v192_v46 = vand.u32 4294901760, %v191_v38  ;;  %v204_v49 = vand.u32 4294901760, %v2033_v24  ;;  %v211_v52 = vand.u32 4294901760, %v2040_v32 }
  0x41   :  { %1656 = vmatprep.subr.bf16.mxu0 %v1938_v0  ;;  %v199_v47 = vand.u32 4294901760, %v198_v39  ;;  %v117_v53 = vand.u32 4294901760, %v80_v40  ;;  %v120_v54 = vand.u32 4294901760, %v81_v41  ;;  %v2071_v55 = vpack.c.bf16 %v108_v28, %v105_v27  ;;  %p1913_p0 = pnand %p1912_p13, %p1906_p10 }
  0x42   :  { %v1669_v51 = vpack.c.bf16 %v185_v44, %v178_v43  ;;  %v205_v56 = vsub.f32 %v2033_v24, %v204_v49  ;;  %v218_v57 = vand.u32 4294901760, %v2048_v36  ;;  %v225_v58 = vand.u32 4294901760, %v2050_v37 }
  0x43   :  { %v1672_v59 = vpack.c.bf16 %v199_v47, %v192_v46  ;;  %v212_v60 = vsub.f32 %v2040_v32, %v211_v52  ;;  %v2082_v61 = vsub.f32 %v80_v40, %v117_v53  ;;  %v84_v62 = vsel %vm82_vm1, %v69_v50, 0 }
  0x44   :  { %1658 = vmatpush3.bf16.msra.mxu0 %v2059_v42  ;;  %1670 = vmatpush3.bf16.msra.mxu1 %v1669_v51  ;;  %v206_v63 = vand.u32 4294901760, %v205_v56  ;;  %v2087_v2 = vsub.f32 %v81_v41, %v120_v54  ;;  %v219_v3 = vsub.f32 %v2048_v36, %v218_v57  ;;  %v226_v4 = vsub.f32 %v2050_v37, %v225_v58 }
  0x45   :  { %1659 = vmatprep.subr.bf16.mxu0 %v1938_v0  ;;  %1671 = vmatprep.subr.bf16.mxu1 %v1938_v0  ;;  %v213_v5 = vand.u32 4294901760, %v212_v60  ;;  %v2095_v6 = vand.u32 4294901760, %v84_v62  ;;  %v232_v7 = vand.u32 4294901760, %v2061_v45  ;;  %v239_v8 = vand.u32 4294901760, %v2064_v48 }
  0x46   :  { %v2099_v9 = vpack.c.bf16 %v114_v35, %v111_v31  ;;  %v220_v10 = vand.u32 4294901760, %v219_v3  ;;  %v227_v11 = vand.u32 4294901760, %v226_v4  ;;  %v246_v12 = vand.u32 4294901760, %v2082_v61 }
  0x47   :  { %v1675_v13 = vpack.c.bf16 %v213_v5, %v206_v63  ;;  %v2104_v14 = vsub.f32 %v84_v62, %v2095_v6  ;;  %v233_v19 = vsub.f32 %v2061_v45, %v232_v7  ;;  %v253_v20 = vand.u32 4294901760, %v2087_v2  ;;  %v67_v62 = vld [vmem:[#allocation5 + $0x30] sm:$0xff]  ;;  %v68_v5 = vld [vmem:[#allocation5 + $0x38] sm:$0xff] }
  0x48   :  { %1661 = vmatpush3.bf16.msra.mxu0 %v2071_v55  ;;  %1673 = vmatpush3.bf16.msra.mxu1 %v1672_v59  ;;  %v240_v23 = vsub.f32 %v2064_v48, %v239_v8  ;;  %v2116_v28 = vpack.c.bf16 %v120_v54, %v117_v53  ;;  %v1678_v31 = vpack.c.bf16 %v227_v11, %v220_v10  ;;  %v701_v10 = vand.u32 4294901760, %v68_v5 }
  0x49   :  { %1662 = vmatprep.subr.bf16.mxu0 %v1938_v0  ;;  %1674 = vmatprep.subr.bf16.mxu1 %v1938_v0  ;;  %v165_v27 = vand.u32 4294901760, %v2104_v14  ;;  %v247_v33 = vsub.f32 %v2082_v61, %v246_v12  ;;  %v234_v35 = vand.u32 4294901760, %v233_v19  ;;  %v254_v39 = vsub.f32 %v2087_v2, %v253_v20 }
  0x4a   :  { %v241_v38 = vand.u32 4294901760, %v240_v23  ;;  %v1687_v43 = vpack.c.bf16 %v2024_v17, %v2022_v16  ;;  %v1690_v50 = vpack.c.bf16 %v2030_v22, %v2026_v18  ;;  %v1693_v51 = vpack.c.bf16 %v2040_v32, %v2033_v24  ;;  %v61_v17 = vld [vmem:[#allocation5] sm:$0xff]  ;;  %v62_v18 = vld [vmem:[#allocation5 + $0x8] sm:$0xff] }
  0x4b   :  { %v166_v34 = vsub.f32 %v2104_v14, %v165_v27  ;;  %v248_v44 = vand.u32 4294901760, %v247_v33  ;;  %v255_v46 = vand.u32 4294901760, %v254_v39  ;;  %v1696_v53 = vpack.c.bf16 %v2050_v37, %v2048_v36 }
  0x4c   :  { %1664 = vmatpush3.bf16.msra.mxu0 %v2099_v9  ;;  %1676 = vmatpush3.bf16.msra.mxu1 %v1675_v13  ;;  %v1681_v41 = vpack.c.bf16 %v241_v38, %v234_v35  ;;  %v1699_v54 = vpack.c.bf16 %v2064_v48, %v2061_v45  ;;  %v1702_v56 = vpack.c.bf16 %v2087_v2, %v2082_v61  ;;  %v680_v24 = vand.u32 4294901760, %v61_v17 }
  0x4d   :  { %1665 = vmatprep.subr.bf16.mxu0 %v1938_v0  ;;  %1677 = vmatprep.subr.bf16.mxu1 %v1938_v0  ;;  %v167_v40 = vand.u32 4294901760, %v166_v34  ;;  %v1684_v47 = vpack.c.bf16 %v255_v46, %v248_v44  ;;  %v1723_v59 = vpack.c.bf16 %v183_v26, %v176_v25  ;;  %v1726_v60 = vpack.c.bf16 %v197_v30, %v190_v29  ;;  %v63_v26 = vld [vmem:[#allocation5 + $0x10] sm:$0xff]  ;;  %v64_v29 = vld [vmem:[#allocation5 + $0x18] sm:$0xff] }
  0x4e   :  { %v1729_v16 = vpack.c.bf16 %v211_v52, %v204_v49  ;;  %v1732_v22 = vpack.c.bf16 %v225_v58, %v218_v57  ;;  %v683_v25 = vand.u32 4294901760, %v62_v18  ;;  %v686_v30 = vand.u32 4294901760, %v63_v26  ;;  %v65_v49 = vld [vmem:[#allocation5 + $0x20] sm:$0xff]  ;;  %v66_v52 = vld [vmem:[#allocation5 + $0x28] sm:$0xff]  ;;  %v60_v57 = vld [vmem:[#allocation2] sm:$0x3] }
  0x4f   :  { %v2203_v32 = vsub.f32 %v61_v17, %v680_v24  ;;  %v689_v37 = vand.u32 4294901760, %v64_v29  ;;  %v692_v48 = vand.u32 4294901760, %v65_v49  ;;  %v695_v58 = vand.u32 4294901760, %v66_v52 }
  0x50   :  { %1667 = vmatpush3.bf16.msra.mxu0 %v2116_v28  ;;  %1679 = vmatpush3.bf16.msra.mxu1 %v1678_v31  ;;  %v2205_v36 = vsub.f32 %v62_v18, %v683_v25  ;;  %v2213_v45 = vsub.f32 %v63_v26, %v686_v30  ;;  %v2222_v61 = vpack.c.bf16 %v683_v25, %v680_v24  ;;  %v698_v2 = vand.u32 4294901760, %v67_v62 }
  0x51   :  { %1680 = vmatprep.subr.bf16.mxu1 %v1938_v0  ;;  %1686 = vmatprep.subr.bf16.mxu0 %v1938_v0  ;;  %v2216_v63 = vsub.f32 %v64_v29, %v689_v37  ;;  %v765_v3 = vand.u32 4294901760, %v2203_v32 }
  0x52   :  { %v772_v4 = vand.u32 4294901760, %v2205_v36  ;;  %v2243_v23 = vsub.f32 %v67_v62, %v698_v2  ;;  %v1783_v18 = vpack.c.bf16 %v2205_v36, %v2203_v32 }
  0x53   :  { %1399 = vmatmul.mubr.f32.vlgmr.msra.gmra.mrb[0].mxu0 %v167_v40  ;;  %v766_v13 = vsub.f32 %v2203_v32, %v765_v3  ;;  %v786_v19 = vand.u32 4294901760, %v2216_v63  ;;  %v2263_v40 = vpack.c.bf16 %v695_v58, %v692_v48  ;;  %v1786_v26 = vpack.c.bf16 %v2216_v63, %v2213_v45 }
  0x54   :  { %1682 = vmatpush3.bf16.msra.mxu1 %v1681_v41  ;;  %1688 = vmatpush3.bf16.msra.mxu0 %v1687_v43  ;;  %v807_v44 = vand.u32 4294901760, %v2243_v23 }
  0x55   :  { %1683 = vmatprep.subr.bf16.mxu1 %v1938_v0  ;;  %1689 = vmatprep.subr.bf16.mxu0 %v1938_v0  ;;  %v767_v34 = vand.u32 4294901760, %v766_v13  ;;  %v787_v38 = vsub.f32 %v2216_v63, %v786_v19 }
  0x56   :  { %1452 = vmatprep.mubr.msk.f32.mxu0 %vm1939_vm0, %v1940_v1 }
  0x58   :  { %1685 = vmatpush3.bf16.msra.mxu1 %v1684_v47  ;;  %1691 = vmatpush3.bf16.msra.mxu0 %v1690_v50  ;;  %v788_v47 = vand.u32 4294901760, %v787_v38  ;;  %v1241_v38 = vld [vmem:[%s2381_s4] ss:$0 sm:$0xff] }
  0x59   :  { %1692 = vmatprep.subr.bf16.mxu0 %v1938_v0  ;;  %1704 = vmatprep.subr.bf16.mxu1 %v1938_v0 }
  0x5b   :  { %1426 = vmatmul.mubr.f32.vlgmr.msra.gmra.mrb[0].mxu1 %v2095_v6 }
  0x5c   :  { %1694 = vmatpush3.bf16.msra.mxu0 %v1693_v51  ;;  %1706 = vmatpush3.bf16.msra.mxu1 %v2020_v15 }
  0x5d   :  { %1695 = vmatprep.subr.bf16.mxu0 %v1938_v0  ;;  %1707 = vmatprep.subr.bf16.mxu1 %v1938_v0 }
  0x5e   :  { %1479 = vmatprep.mubr.msk.f32.mxu1 %vm1939_vm0, %v1940_v1 }
  0x60   :  { %1697 = vmatpush3.bf16.msra.mxu0 %v1696_v53  ;;  %1709 = vmatpush3.bf16.msra.mxu1 %v2028_v21  ;;  %v2281_v53 = vpack.c.bf16 %v701_v10, %v698_v2 }
  0x61   :  { %1698 = vmatprep.subr.bf16.mxu0 %v1938_v0  ;;  %1710 = vmatprep.subr.bf16.mxu1 %v1938_v0 }
  0x64   :  { %1700 = vmatpush3.bf16.msra.mxu0 %v1699_v54  ;;  %1712 = vmatpush3.bf16.msra.mxu1 %v2059_v42  ;;  %v808_v54 = vsub.f32 %v2243_v23, %v807_v44 }
  0x65   :  { %1701 = vmatprep.subr.bf16.mxu0 %v1938_v0  ;;  %1713 = vmatprep.subr.bf16.mxu1 %v1938_v0 }
  0x68   :  { %1703 = vmatpush3.bf16.msra.mxu0 %v1702_v56  ;;  %1715 = vmatpush3.bf16.msra.mxu1 %v2071_v55 }
  0x69   :  { %1716 = vmatprep.subr.bf16.mxu1 %v1938_v0  ;;  %1722 = vmatprep.subr.bf16.mxu0 %v1938_v0 }
  0x6b   :  { %1453 = vmatmul.mubr.f32.vlgmr.msra.gmra.mrb[2].mxu0 %v2104_v14  ;;  %v773_v14 = vsub.f32 %v2205_v36, %v772_v4 }
  0x6c   :  { %1718 = vmatpush3.bf16.msra.mxu1 %v2099_v9  ;;  %1724 = vmatpush3.bf16.msra.mxu0 %v1723_v59 }
  0x6d   :  { %1719 = vmatprep.subr.bf16.mxu1 %v1938_v0  ;;  %1725 = vmatprep.subr.bf16.mxu0 %v1938_v0  ;;  %v774_v35 = vand.u32 4294901760, %v773_v14 }
  0x6e   :  { %1506 = vmatprep.mubr.msk.f32.mxu0 %vm1939_vm0, %v1940_v1 }
  0x6f   :  { %v1771_v46 = vpack.c.bf16 %v774_v35, %v767_v34 }
  0x70   :  { %1721 = vmatpush3.bf16.msra.mxu1 %v2116_v28  ;;  %1727 = vmatpush3.bf16.msra.mxu0 %v1726_v60 }
  0x71   :  { %1728 = vmatprep.subr.bf16.mxu0 %v1938_v0  ;;  %1740 = vmatprep.subr.bf16.mxu1 %v1938_v0 }
  0x73   :  { %1480 = vmatmul.mubr.f32.vlgmr.msra.gmra.mrb[2].mxu1 %v165_v27 }
  0x74   :  { %1730 = vmatpush3.bf16.msra.mxu0 %v1729_v16  ;;  %1742 = vmatpush3.bf16.msra.mxu1 %v2020_v15  ;;  %v1735_v15 = vpack.c.bf16 %v239_v8, %v232_v7  ;;  %v677_v7 = vsel %vm675_vm2, %v60_v57, 0  ;;  %v2224_v8 = vsub.f32 %v65_v49, %v692_v48 }
  0x75   :  { %1731 = vmatprep.subr.bf16.mxu0 %v1938_v0  ;;  %1743 = vmatprep.subr.bf16.mxu1 %v1938_v0  ;;  %v2227_v11 = vand.u32 4294901760, %v677_v7 }
  0x76   :  { %1533 = vmatprep.mubr.msk.f32.mxu1 %vm1939_vm0, %v1940_v1  ;;  %v793_v33 = vand.u32 4294901760, %v2224_v8 }
  0x77   :  { %v2252_v31 = vsub.f32 %v677_v7, %v2227_v11 }
  0x78   :  { %1733 = vmatpush3.bf16.msra.mxu0 %v1732_v22  ;;  %1745 = vmatpush3.bf16.msra.mxu1 %v2028_v21  ;;  %v1738_v21 = vpack.c.bf16 %v253_v20, %v246_v12  ;;  %v2230_v12 = vsub.f32 %v66_v52, %v695_v58  ;;  %v2241_v20 = vpack.c.bf16 %v689_v37, %v686_v30  ;;  %v809_v22 = vand.u32 4294901760, %v808_v54 }
  0x79   :  { %1734 = vmatprep.subr.bf16.mxu0 %v1938_v0  ;;  %1746 = vmatprep.subr.bf16.mxu1 %v1938_v0  ;;  %v754_v41 = vand.u32 4294901760, %v2252_v31  ;;  %v794_v43 = vsub.f32 %v2224_v8, %v793_v33 }
  0x7a   :  { %v800_v39 = vand.u32 4294901760, %v2230_v12  ;;  %v1789_v29 = vpack.c.bf16 %v2230_v12, %v2224_v8 }
  0x7b   :  { %v795_v59 = vand.u32 4294901760, %v794_v43 }
  0x7c   :  { %1736 = vmatpush3.bf16.msra.mxu0 %v1735_v15  ;;  %1748 = vmatpush3.bf16.msra.mxu1 %v2059_v42  ;;  %v779_v42 = vand.u32 4294901760, %v2213_v45  ;;  %v801_v50 = vsub.f32 %v2230_v12, %v800_v39  ;;  %v1807_v15 = vpack.c.bf16 %v772_v4, %v765_v3  ;;  %v1813_v32 = vpack.c.bf16 %v800_v39, %v793_v33 }
  0x7d   :  { %1737 = vmatprep.subr.bf16.mxu0 %v1938_v0  ;;  %1749 = vmatprep.subr.bf16.mxu1 %v1938_v0 }
  0x7e   :  { %v780_v27 = vsub.f32 %v2213_v45, %v779_v42  ;;  %v802_v60 = vand.u32 4294901760, %v801_v50  ;;  %v1810_v37 = vpack.c.bf16 %v786_v19, %v779_v42 }
  0x80   :  { %1739 = vmatpush3.bf16.msra.mxu0 %v1738_v21  ;;  %1751 = vmatpush3.bf16.msra.mxu1 %v2071_v55  ;;  %v2246_v55 = vsub.f32 %v68_v5, %v701_v10  ;;  %v1777_v17 = vpack.c.bf16 %v802_v60, %v795_v59 }
  0x81   :  { %1752 = vmatprep.subr.bf16.mxu1 %v1938_v0  ;;  %1758 = vmatprep.subr.bf16.mxu0 %v1938_v0 }
  0x82   :  { %v814_v51 = vand.u32 4294901760, %v2246_v55  ;;  %v1792_v30 = vpack.c.bf16 %v2246_v55, %v2243_v23 }
  0x83   :  { %1507 = vmatmul.mubr.f32.vlgmr.msra.gmra.mrb[4].mxu0 %v2095_v6 }
  0x84   :  { %1754 = vmatpush3.bf16.msra.mxu1 %v2099_v9  ;;  %1760 = vmatpush3.bf16.msra.mxu0 %v2222_v61  ;;  %v781_v9 = vand.u32 4294901760, %v780_v27  ;;  %v1816_v36 = vpack.c.bf16 %v814_v51, %v807_v44 }
  0x85   :  { %1755 = vmatprep.subr.bf16.mxu1 %v1938_v0  ;;  %1761 = vmatprep.subr.bf16.mxu0 %v1938_v0 }
  0x86   :  { %1552 = vmatprep.mubr.msk.f32.mxu0 %vm1939_vm0, %v1940_v1  ;;  %v1774_v56 = vpack.c.bf16 %v788_v47, %v781_v9 }
  0x88   :  { %1757 = vmatpush3.bf16.msra.mxu1 %v2116_v28  ;;  %1763 = vmatpush3.bf16.msra.mxu0 %v2241_v20  ;;  %v755_v28 = vsub.f32 %v2252_v31, %v754_v41 }
  0x89   :  { %1764 = vmatprep.subr.bf16.mxu0 %v1938_v0  ;;  %1770 = vmatprep.subr.bf16.mxu1 %v1938_v0 }
  0x8a   :  { %v756_v16 = vand.u32 4294901760, %v755_v28 }
  0x8b   :  { %1534 = vmatmul.mubr.f32.vlgmr.msra.gmra.mrb[4].mxu1 %v2095_v6  ;;  %v815_v6 = vsub.f32 %v2246_v55, %v814_v51 }
  0x8c   :  { %1766 = vmatpush3.bf16.msra.mxu0 %v2263_v40  ;;  %1772 = vmatpush3.bf16.msra.mxu1 %v1771_v46 }
  0x8d   :  { %1767 = vmatprep.subr.bf16.mxu0 %v1938_v0  ;;  %1773 = vmatprep.subr.bf16.mxu1 %v1938_v0  ;;  %v816_v24 = vand.u32 4294901760, %v815_v6 }
  0x8e   :  { %1571 = vmatprep.mubr.msk.f32.mxu1 %vm1939_vm0, %v1940_v1 }
  0x8f   :  { %v1780_v25 = vpack.c.bf16 %v816_v24, %v809_v22 }
  0x90   :  { %1769 = vmatpush3.bf16.msra.mxu0 %v2281_v53  ;;  %1775 = vmatpush3.bf16.msra.mxu1 %v1774_v56 }
  0x91   :  { %1776 = vmatprep.subr.bf16.mxu1 %v1938_v0  ;;  %1782 = vmatprep.subr.bf16.mxu0 %v1938_v0 }
  0x93   :  { %1553 = vmatmul.mubr.f32.vlgmr.msra.gmra.mrb[6].mxu0 %v756_v16 }
  0x94   :  { %1778 = vmatpush3.bf16.msra.mxu1 %v1777_v17  ;;  %1784 = vmatpush3.bf16.msra.mxu0 %v1783_v18 }
  0x95   :  { %1779 = vmatprep.subr.bf16.mxu1 %v1938_v0  ;;  %1785 = vmatprep.subr.bf16.mxu0 %v1938_v0 }
  0x96   :  { %1590 = vmatprep.mubr.msk.f32.mxu0 %vm1939_vm0, %v1940_v1 }
  0x98   :  { %1781 = vmatpush3.bf16.msra.mxu1 %v1780_v25  ;;  %1787 = vmatpush3.bf16.msra.mxu0 %v1786_v26 }
  0x99   :  { %1788 = vmatprep.subr.bf16.mxu0 %v1938_v0  ;;  %1794 = vmatprep.subr.bf16.mxu1 %v1938_v0 }
  0x9b   :  { %1572 = vmatmul.mubr.f32.vlgmr.msra.gmra.mrb[6].mxu1 %v2227_v11 }
  0x9c   :  { %1790 = vmatpush3.bf16.msra.mxu0 %v1789_v29  ;;  %1796 = vmatpush3.bf16.msra.mxu1 %v2222_v61 }
  0x9d   :  { %1791 = vmatprep.subr.bf16.mxu0 %v1938_v0  ;;  %1797 = vmatprep.subr.bf16.mxu1 %v1938_v0 }
  0x9e   :  { %1609 = vmatprep.mubr.msk.f32.mxu1 %vm1939_vm0, %v1940_v1 }
  0xa0   :  { %1793 = vmatpush3.bf16.msra.mxu0 %v1792_v30  ;;  %1799 = vmatpush3.bf16.msra.mxu1 %v2241_v20 }
  0xa1   :  { %1800 = vmatprep.subr.bf16.mxu1 %v1938_v0  ;;  %1806 = vmatprep.subr.bf16.mxu0 %v1938_v0 }
  0xa3   :  { %1591 = vmatmul.mubr.f32.vlgmr.msra.gmra.mrb[8].mxu0 %v2252_v31 }
  0xa4   :  { %1802 = vmatpush3.bf16.msra.mxu1 %v2263_v40  ;;  %1808 = vmatpush3.bf16.msra.mxu0 %v1807_v15 }
  0xa5   :  { %1803 = vmatprep.subr.bf16.mxu1 %v1938_v0  ;;  %1809 = vmatprep.subr.bf16.mxu0 %v1938_v0 }
  0xa6   :  { %1628 = vmatprep.mubr.msk.f32.mxu0 %vm1939_vm0, %v1940_v1 }
  0xa8   :  { %1805 = vmatpush3.bf16.msra.mxu1 %v2281_v53  ;;  %1811 = vmatpush3.bf16.msra.mxu0 %v1810_v37 }
  0xa9   :  { %1812 = vmatprep.subr.bf16.mxu0 %v1938_v0  ;;  %1818 = vmatprep.subr.bf16.mxu1 %v1938_v0 }
  0xab   :  { %1610 = vmatmul.mubr.f32.vlgmr.msra.gmra.mrb[8].mxu1 %v754_v41 }
  0xac   :  { %1814 = vmatpush3.bf16.msra.mxu0 %v1813_v32  ;;  %1820 = vmatpush3.bf16.msra.mxu1 %v2222_v61 }
  0xad   :  { %1815 = vmatprep.subr.bf16.mxu0 %v1938_v0  ;;  %1821 = vmatprep.subr.bf16.mxu1 %v1938_v0 }
  0xae   :  { %1647 = vmatprep.mubr.msk.f32.mxu1 %vm1939_vm0, %v1940_v1 }
  0xb0   :  { %1817 = vmatpush3.bf16.msra.mxu0 %v1816_v36  ;;  %1823 = vmatpush3.bf16.msra.mxu1 %v2241_v20 }
  0xb1   :  { %1824 = vmatprep.subr.bf16.mxu1 %v1938_v0 }
  0xb3   :  { %1629 = vmatmul.mubr.f32.vlgmr.msra.gmra.mrb[10].mxu0 %v2227_v11 }
  0xb4   :  { %1826 = vmatpush3.bf16.msra.mxu1 %v2263_v40 }
  0xb5   :  { %1827 = vmatprep.subr.bf16.mxu1 %v1938_v0 }
  0xb8   :  { %1829 = vmatpush3.bf16.msra.mxu1 %v2281_v53 }
  0xbb   :  { %1648 = vmatmul.mubr.f32.vlgmr.msra.gmra.mrb[10].mxu1 %v2227_v11 }
 0x126   :  { %v169_v49 = vpop.f32.mrb[0].mxu0 }
 0x127   :  { %v1400_v52 = vpop.f32.mrb[1].mxu0 }
 0x12e   :  { %v300_v57 = vpop.f32.mrb[0].mxu1 }
 0x12f   :  { %v301_v21 = vadd.f32 %v300_v57, %v169_v49  ;;  %v1427_v1 = vpop.f32.mrb[1].mxu1 }
 0x13e   :  { %v396_v45 = vpop.f32.mrb[2].mxu0 }
 0x13f   :  { %v397_v48 = vadd.f32 %v396_v45, %v301_v21  ;;  %v1454_v58 = vpop.f32.mrb[3].mxu0 }
 0x146   :  { %v481_v62 = vpop.f32.mrb[2].mxu1 }
 0x147   :  { %v482_v63 = vadd.f32 %v481_v62, %v397_v48  ;;  %v1481_v3 = vpop.f32.mrb[3].mxu1 }
 0x156   :  { %v588_v4 = vpop.f32.mrb[4].mxu0 }
 0x157   :  { %v589_v5 = vadd.f32 %v588_v4, %v482_v63  ;;  %v1508_v7 = vpop.f32.mrb[5].mxu0 }
 0x15e   :  { %v671_v61 = vpop.f32.mrb[4].mxu1 }
 0x15f   :  { %v672_v0 = vadd.f32 %v671_v61, %v589_v5  ;;  %v1535_v2 = vpop.f32.mrb[5].mxu1 }
 0x166   :  { %v758_v8 = vpop.f32.mrb[6].mxu0 }
 0x167   :  { %v759_v10 = vadd.f32 %v758_v8, %v672_v0  ;;  %v1554_v42 = vpop.f32.mrb[7].mxu0 }
 0x16e   :  { %v869_v11 = vpop.f32.mrb[6].mxu1 }
 0x16f   :  { %v870_v12 = vadd.f32 %v869_v11, %v759_v10  ;;  %v1573_v13 = vpop.f32.mrb[7].mxu1 }
 0x176   :  { %v957_v14 = vpop.f32.mrb[8].mxu0 }
 0x177   :  { %v958_v19 = vadd.f32 %v957_v14, %v870_v12  ;;  %v1592_v20 = vpop.f32.mrb[9].mxu0 }
 0x17e   :  { %v1038_v23 = vpop.f32.mrb[8].mxu1 }
 0x17f   :  { %v1039_v55 = vadd.f32 %v1038_v23, %v958_v19  ;;  %v1611_v27 = vpop.f32.mrb[9].mxu1 }
 0x186   :  { %v1133_v31 = vpop.f32.mrb[10].mxu0 }
 0x187   :  { %v1134_v33 = vadd.f32 %v1133_v31, %v1039_v55  ;;  %v1630_v34 = vpop.f32.mrb[11].mxu0 }
 0x18e   :  { %v1212_v35 = vpop.f32.mrb[10].mxu1 }
 0x18f   :  { %v1213_v39 = vadd.f32 %v1212_v35, %v1134_v33  ;;  %v1649_v40 = vpop.f32.mrb[11].mxu1 }
 0x191   :  { %v1223_v9 = vadd.f32 %v1241_v38, %v1213_v39 }
 0x193   :  { %1224 = vst [vmem:[#allocation8] sm:$0x3] %v1223_v9 }
 0x194   :  { %1916 = shalt.err (!%p1913_p0)
}
 0x195   :  { %s1917_s11 = scalar_lea.hbm %s2382_s5, 32 }
 0x196   :  { %p1918_p1 = scmp.ne.s32.totalorder %s2382_s5, %s1917_s11  ;;  %p1921_p2 = scmp.lt.u32.totalorder %s1917_s11, %s2382_s5 }
 0x198   :  { %p1923_p3 = pnand %p1921_p2, %p1918_p1 }
 0x19a   :  { %1926 = shalt.err (!%p1923_p3)
}
 0x19b   :  { %1234 = dma.vmem_to_hbm [thread:$0]  %s1232_s7, 32, %s2382_s5, [#allocation4]  }
 0x19c   :  { %1931 = dma.done.wait [#allocation4], 32  }
 0x19d   :  { %1932 = vsyncadd [#allocation4], 4294967264 }
 0x19e   :  { %1238 = vsyncpa [#allocation3], 1 }
 0x19f   :  { %1239 = vsyncpa [#allocation6], 1 }
 0x1a0   :  { %1240 = vsyncpa [#allocation4], 1 }

</bundles_post_ra>
